<compile_context>
chip_gen: v7x
topology: tpu7x:2x2x1
jax: 0.10.0
libtpu: 0.0.40
codegen_flags: <defaults>
</compile_context>

<pallas_src>
import jax
import jax.numpy as jnp
from jax.experimental import pallas as pl
from jax.experimental.pallas import tpu as pltpu


def _pa_kernel(x_ref, w1_ref, b1_ref, w2_ref, b2_ref, o_ref):
    # x_ref:  (C, TS)        w1_ref: (hidden, C)   b1_ref: (hidden, 1)
    # w2_ref: (1, hidden)    b2_ref: (1, 1) scalar in SMEM
    # o_ref:  (C, TS)
    x = x_ref[...]
    # conv1 (1x1): (hidden, C) @ (C, TS) -> (hidden, TS), f32 accumulation on MXU.
    h = jnp.dot(w1_ref[...], x, preferred_element_type=jnp.float32)
    h = jnp.maximum(h + b1_ref[...], 0.0)                       # bias + ReLU
    # conv2 (1x1): (1, hidden) @ (hidden, TS) -> lane-dense (1, TS) result.
    y = jnp.dot(w2_ref[...], h, preferred_element_type=jnp.float32) + b2_ref[0, 0]
    y = jax.nn.sigmoid(y)                                       # (1, TS) attention map
    # Broadcast over the channel (sublane) axis; multiply in x's native dtype
    # (bf16 VPU on v6e/v7x, f32 everywhere else).
    o_ref[...] = x * y.astype(x.dtype)


def pa_layer(x_nchw, w1, b1, w2, b2, *, ts=1024):
    """Pixel attention, NCHW-native.

    x_nchw: (N, C, H, W)
    w1:     (C//8, C)   -- PyTorch conv1 weight squeezed from (C//8, C, 1, 1)
    b1:     (C//8,)
    w2:     (1, C//8)   -- PyTorch conv2 weight squeezed from (1, C//8, 1, 1)
    b2:     (1,)
    """
    N, C, H, W = x_nchw.shape
    hidden = w1.shape[0]
    hw = H * W

    # Spatial tile: a multiple of 128 (lane-dense), clipped to the padded spatial
    # extent so small inputs get a single tile.
    ts = max(128, (min(ts, pl.cdiv(hw, 128) * 128) // 128) * 128)
    hw_pad = pl.cdiv(hw, ts) * ts

    x_flat = x_nchw.reshape(N, C, hw)
    if hw_pad != hw:
        # Zero padding is safe: padded columns produce out = 0 * y = 0 and are
        # sliced off below.
        x_flat = jnp.pad(x_flat, ((0, 0), (0, 0), (0, hw_pad - hw)))

    b1_col = b1.reshape(hidden, 1)
    b2_2d = b2.reshape(1, 1)

    out_flat = pl.pallas_call(
        _pa_kernel,
        out_shape=jax.ShapeDtypeStruct((N, C, hw_pad), x_nchw.dtype),
        grid_spec=pltpu.PrefetchScalarGridSpec(
            num_scalar_prefetch=0,
            grid=(N, hw_pad // ts),
            in_specs=[
                pl.BlockSpec((None, C, ts), lambda n, s: (n, 0, s)),   # x tile
                pl.BlockSpec((hidden, C), lambda n, s: (0, 0)),        # W1 (resident)
                pl.BlockSpec((hidden, 1), lambda n, s: (0, 0)),        # b1 (resident)
                pl.BlockSpec((1, hidden), lambda n, s: (0, 0)),        # W2 (resident)
                pl.BlockSpec(memory_space=pltpu.MemorySpace.SMEM),     # b2 scalar
            ],
            out_specs=pl.BlockSpec((None, C, ts), lambda n, s: (n, 0, s)),
        ),
        compiler_params=pltpu.CompilerParams(
            dimension_semantics=("parallel", "parallel")),
    )(x_flat, w1, b1_col, w2, b2_2d)

    if hw_pad != hw:
        out_flat = out_flat[:, :, :hw]
    return out_flat.reshape(N, C, H, W)


def _reference(x_nchw, w1, b1, w2, b2):
    # Pure-JAX reference with identical math (1x1 convs as einsums over channel).
    xf = x_nchw.astype(jnp.float32)
    h = jnp.einsum("dc,nchw->ndhw", w1.astype(jnp.float32), xf) + b1[None, :, None, None]
    h = jnp.maximum(h, 0.0)
    y = jnp.einsum("od,ndhw->nohw", w2.astype(jnp.float32), h) + b2[None, :, None, None]
    y = jax.nn.sigmoid(y)
    return (xf * y).astype(x_nchw.dtype)


if __name__ == "__main__":
    # Small shapes consistent with the module: channel must be >= 8 (channel // 8 >= 1).
    N, C, H, W = 2, 16, 16, 16
    hidden = C // 8

    key = jax.random.PRNGKey(0)
    kx, kw1, kb1, kw2, kb2 = jax.random.split(key, 5)

    x = jax.random.normal(kx, (N, C, H, W), dtype=jnp.float32)
    # Synthetic parameters stored in the conv-weight layout (out_ch, in_ch), 1x1 squeezed.
    w1 = jax.random.normal(kw1, (hidden, C), dtype=jnp.float32) * 0.1
    b1 = jax.random.normal(kb1, (hidden,), dtype=jnp.float32) * 0.1
    w2 = jax.random.normal(kw2, (1, hidden), dtype=jnp.float32) * 0.1
    b2 = jax.random.normal(kb2, (1,), dtype=jnp.float32) * 0.1

    out = jax.block_until_ready(pa_layer(x, w1, b1, w2, b2))
    ref = _reference(x, w1, b1, w2, b2)

    assert out.shape == x.shape
    assert jnp.allclose(out, ref, atol=1e-5, rtol=1e-5), "mismatch vs reference"

    print("KERNEL_OK")
</pallas_src>

<mosaic_0001>
module attributes {stable_mosaic.version = 11 : i64} {
  func.func @_pa_kernel(%arg0: i32, %arg1: i32, %arg2: memref<1x16x256xf32, #tpu.memory_space<vmem>>, %arg3: memref<2x16xf32, #tpu.memory_space<vmem>>, %arg4: memref<2x1xf32, #tpu.memory_space<vmem>>, %arg5: memref<1x2xf32, #tpu.memory_space<vmem>>, %arg6: memref<1x1xf32, #tpu.memory_space<smem>>, %arg7: memref<1x16x256xf32, #tpu.memory_space<vmem>>) attributes {dimension_semantics = [#tpu.dimension_semantics<parallel>, #tpu.dimension_semantics<parallel>], iteration_bounds = array<i64: 2, 1>, scalar_prefetch = 0 : i64, scratch_operands = 0 : i64, tpu.core_type = #tpu.core_type<tc>, window_params = [{transform_indices = @transform_0, window_bounds = array<i64: 1, 16, 256>}, {pipeline_mode = #tpu.pipeline_mode<synchronous>, transform_indices = @transform_1, window_bounds = array<i64: 2, 16>}, {pipeline_mode = #tpu.pipeline_mode<synchronous>, transform_indices = @transform_2, window_bounds = array<i64: 2, 1>}, {pipeline_mode = #tpu.pipeline_mode<synchronous>, transform_indices = @transform_3, window_bounds = array<i64: 1, 2>}, {transform_indices = @transform_4, window_bounds = array<i64: 1, 1>}, {transform_indices = @transform_5, window_bounds = array<i64: 1, 16, 256>}]} {
    %c0 = arith.constant 0 : index
    %c0_0 = arith.constant 0 : index
    %c0_1 = arith.constant 0 : index
    %0 = vector.load %arg2[%c0, %c0_0, %c0_1] : memref<1x16x256xf32, #tpu.memory_space<vmem>>, vector<1x16x256xf32>
    %1 = vector.shape_cast %0 : vector<1x16x256xf32> to vector<16x256xf32>
    %c0_2 = arith.constant 0 : index
    %c0_3 = arith.constant 0 : index
    %2 = vector.load %arg3[%c0_2, %c0_3] : memref<2x16xf32, #tpu.memory_space<vmem>>, vector<2x16xf32>
    %cst = arith.constant dense<0.000000e+00> : vector<2x256xf32>
    %3 = tpu.matmul %2, %1, %cst {dimension_numbers = #tpu.dot_dimension_numbers<[1], [0], [0], [1], [0, 0, 1, 1], [], []>} : vector<2x16xf32>, vector<16x256xf32>, vector<2x256xf32> -> vector<2x256xf32>
    %c0_4 = arith.constant 0 : index
    %c0_5 = arith.constant 0 : index
    %4 = vector.load %arg4[%c0_4, %c0_5] : memref<2x1xf32, #tpu.memory_space<vmem>>, vector<2x1xf32>
    %5 = vector.broadcast %4 : vector<2x1xf32> to vector<2x256xf32>
    %6 = arith.addf %3, %5 : vector<2x256xf32>
    %cst_6 = arith.constant 0.000000e+00 : f32
    %7 = vector.broadcast %cst_6 : f32 to vector<2x256xf32>
    %8 = arith.maximumf %6, %7 : vector<2x256xf32>
    %c0_7 = arith.constant 0 : index
    %c0_8 = arith.constant 0 : index
    %9 = vector.load %arg5[%c0_7, %c0_8] : memref<1x2xf32, #tpu.memory_space<vmem>>, vector<1x2xf32>
    %cst_9 = arith.constant dense<0.000000e+00> : vector<1x256xf32>
    %10 = tpu.matmul %9, %8, %cst_9 {dimension_numbers = #tpu.dot_dimension_numbers<[1], [0], [0], [1], [0, 0, 1, 1], [], []>} : vector<1x2xf32>, vector<2x256xf32>, vector<1x256xf32> -> vector<1x256xf32>
    %c0_10 = arith.constant 0 : index
    %c0_11 = arith.constant 0 : index
    %11 = memref.load %arg6[%c0_10, %c0_11] : memref<1x1xf32, #tpu.memory_space<smem>>
    %12 = vector.broadcast %11 : f32 to vector<1x256xf32>
    %13 = arith.addf %10, %12 : vector<1x256xf32>
    %14 = arith.negf %13 : vector<1x256xf32>
    %15 = math.exp %14 : vector<1x256xf32>
    %cst_12 = arith.constant 1.000000e+00 : f32
    %16 = vector.broadcast %cst_12 : f32 to vector<1x256xf32>
    %17 = arith.addf %16, %15 : vector<1x256xf32>
    %18 = arith.divf %16, %17 : vector<1x256xf32>
    %19 = vector.broadcast %18 : vector<1x256xf32> to vector<16x256xf32>
    %20 = arith.mulf %1, %19 : vector<16x256xf32>
    %c0_13 = arith.constant 0 : index
    %c0_14 = arith.constant 0 : index
    %c0_15 = arith.constant 0 : index
    %21 = vector.load %arg7[%c0_13, %c0_14, %c0_15] : memref<1x16x256xf32, #tpu.memory_space<vmem>>, vector<1x16x256xf32>
    %22 = vector.shape_cast %21 : vector<1x16x256xf32> to vector<16x256xf32>
    %23 = vector.shape_cast %20 : vector<16x256xf32> to vector<1x16x256xf32>
    tpu.vector_store %arg7[%c0_13, %c0_14, %c0_15], %23 {strides = array<i32>} : memref<1x16x256xf32, #tpu.memory_space<vmem>>, vector<1x16x256xf32>,
    return
  }
  func.func @transform_0(%arg0: i32, %arg1: i32) -> (i32, i32, i32) {
    %c0_i32 = arith.constant 0 : i32
    %c0_i32_0 = arith.constant 0 : i32
    return %arg0, %c0_i32, %arg1 : i32, i32, i32
  }
  func.func @transform_1(%arg0: i32, %arg1: i32) -> (i32, i32) {
    %c0_i32 = arith.constant 0 : i32
    %c0_i32_0 = arith.constant 0 : i32
    %c0_i32_1 = arith.constant 0 : i32
    return %c0_i32, %c0_i32_0 : i32, i32
  }
  func.func @transform_2(%arg0: i32, %arg1: i32) -> (i32, i32) {
    %c0_i32 = arith.constant 0 : i32
    %c0_i32_0 = arith.constant 0 : i32
    %c0_i32_1 = arith.constant 0 : i32
    return %c0_i32, %c0_i32_0 : i32, i32
  }
  func.func @transform_3(%arg0: i32, %arg1: i32) -> (i32, i32) {
    %c0_i32 = arith.constant 0 : i32
    %c0_i32_0 = arith.constant 0 : i32
    %c0_i32_1 = arith.constant 0 : i32
    return %c0_i32, %c0_i32_0 : i32, i32
  }
  func.func @transform_4(%arg0: i32, %arg1: i32) -> (i32, i32) {
    %c0_i32 = arith.constant 0 : i32
    %c0_i32_0 = arith.constant 0 : i32
    %c0_i32_1 = arith.constant 0 : i32
    return %c0_i32, %c0_i32_0 : i32, i32
  }
  func.func @transform_5(%arg0: i32, %arg1: i32) -> (i32, i32, i32) {
    %c0_i32 = arith.constant 0 : i32
    %c0_i32_0 = arith.constant 0 : i32
    return %arg0, %c0_i32, %arg1 : i32, i32, i32
  }
}

</mosaic_0001>

<bundles_post_ra>
// kernel: tpu_custom_call.1
= control target key start
LH: loop header
LB: loop body
LE: loop exit
PB: predicated region body
PF: predicated region fallthrough
CT: control target
= control target key end

     0   :  { %s1015_s0 = inlined_call_operand.hbm [shape: f32[2,16,256], index: 0, kind: input, shape index: {}]   ;;  %s1016_s1 = inlined_call_operand.vmem [shape: f32[2,16], index: 1, kind: input, shape index: {}]   ;;  %s1017_s2 = inlined_call_operand.vmem [shape: f32[2,1], index: 2, kind: input, shape index: {}]   ;;  %s1018_s3 = inlined_call_operand.vmem [shape: f32[1,2], index: 3, kind: input, shape index: {}]   ;;  %s1019_s4 = inlined_call_operand.<no memory space> [shape: f32[1,1], index: 4, kind: input, shape index: {}]   ;;  %s1020_s5 = inlined_call_operand.hbm [shape: f32[2,16,256], index: 5, kind: output, shape index: {}]  }
   0x1   :  { %10 = sst [smem:[#allocation2]] %s1019_s4 }
   0x2   :  { %11 = vsyncpa [#allocation4], 0 }
   0x3   :  { %13 = vsyncpa [#allocation4 + $0x1], 0 }
   0x4   :  { %14 = vsyncpa [#allocation5], 0 }
   0x5   :  { %16 = vsyncpa [#allocation5 + $0x1], 0  ;;  %s827_s20 = smov 0   ;;  %s829_s21 = smov 0  }
   0x6   :  { %s831_s22 = smov 0   ;;  %s833_s23 = smov 0  }
   0x7   :  { %s835_s24 = smov 0   ;;  %s837_s25 = smov 0  }
   0x8 LB: > { %s568_s4 = sadd.s32 4294967295, %s784_s25   ;;  %s569_s26 = sadd.s32 4294967294, %s784_s25   ;;  %s784_s25 = sphi %s837_s25, %s22_s25   ;;  %s780_s24 = sphi %s835_s24, %s1035_s24   ;;  %s776_s23 = sphi %s833_s23, %s1034_s23   ;;  %s772_s22 = sphi %s831_s22, %s1033_s22   ;;  %s768_s21 = sphi %s829_s21, %s1032_s21   ;;  %s764_s20 = sphi %s827_s20, %s1031_s20  }
   0x9   : > { %s34_s27 = sadd.s32 1, %s780_s24  ;;  %s43_s28 = sadd.s32 1, %s772_s22 }
   0xa   : > { %p36_p0 = scmp.ge.s32.totalorder %s34_s27, 2  ;;  %p50_p1 = scmp.ne.s32.totalorder %s772_s22, %s768_s21 }
   0xb   : > { %p51_p2 = scmp.eq.s32.totalorder %s784_s25, 0  ;;  %p56_p3 = scmp.ne.s32.totalorder %s768_s21, %s764_s20 }
   0xc   : > { %s1037_s27 = smov (%p36_p0, %s34_s27), 0  ;;  %p57_p5 = scmp.eq.s32.totalorder %s568_s4, 0 }
   0xd   : > { %p868_p4 = por %p51_p2, %p50_p1  ;;  %s38_s30 = ssub.s32 %s780_s24, %s1037_s27 }
   0xe   : > { %p166_p6 = scmp.eq.s32.totalorder %s568_s4, 1  ;;  %p41_p7 = scmp.eq.s32.totalorder %s38_s30, 0 }
   0xf   : > { %p874_p8 = por %p57_p5, %p56_p3  ;;  %p172_p10 = scmp.eq.s32.totalorder %s569_s26, 1 }
  0x10   : > { %p878_p9 = por %p166_p6, %p50_p1  ;;  %p607_p13 = scmp.lt.s32.totalorder %s784_s25, 2 }
  0x11   : > { %s883_s8 = scalar_select %p41_p7, %s772_s22, %s43_s28  }
  0x12   : > { %s1024_s7 = scalar_select %p878_p9, 1, 0 }
  0x13   : > { %p885_p11 = por %p172_p10, %p56_p3  ;;  %s204_s10 = sand.u32 1, %s772_s22  }
  0x14   : > { %s572_s11 = sshll.u32 %s204_s10, 5  ;;  %s589_s12 = sshll.u32 %s780_s24, 9 }
  0x15   : > { %s1025_s9 = scalar_select %p885_p11, 1, 0 }
  0x16   : > { %s896_s15 = scalar_lea.hbm %s1015_s0, %s589_s12  ;;  %s208_s16 = scalar_lea.vmem [#allocation3], %s572_s11 }
  0x17   : > { %s217_s17 = sshll.u32 %s208_s16, 4  ;;  %p902_p0 = pnand %p607_p13, %p868_p4  ;;  %s898_s17 = int_to_ptr.vmem [resolvable:$true] %s217_s17 }
  0x18   : > { %s907_s19 = scalar_lea.sflag [#allocation4], %s204_s10  ;;  %s672_s4 = scalar_lea.hbm %s896_s15, 512 }
  0x19   : > { %p673_p2 = scmp.ne.s32.totalorder %s896_s15, %s672_s4  ;;  %p674_p3 = pneg %p902_p0 }
  0x1a   : > { %s677_s29 = scalar_lea.hbm %s1015_s0, 1024  ;;  %p678_p4 = scmp.lt.u32.totalorder %s896_s15, %s1015_s0 }
  0x1b   : > { %p675_p5 = pnand %p674_p3, %p673_p2  ;;  %p679_p7 = scmp.lt.u32.totalorder %s677_s29, %s672_s4 }
  0x1c   : > { %p681_p13 = scmp.lt.u32.totalorder %s672_s4, %s896_s15 }
  0x1d   : > { %p676_p6 = pneg %p675_p5  ;;  %p680_p10 = por %p679_p7, %p678_p4 }
  0x1f   : > { %p682_p12 = por %p681_p13, %p680_p10 }
  0x21   : > { %p683_p1 = pnand %p682_p12, %p676_p6 }
  0x23   : > { %686 = shalt.err (!%p683_p1)
}
  0x24   : > { %s687_s10 = scalar_lea.vmem %s898_s17, 512  ;;  %s786_s12 = smov [#allocation3]  }
  0x25   : > { %p688_p2 = scmp.ne.s32.totalorder %s898_s17, %s687_s10  ;;  %s692_s13 = sshll.u32 %s786_s12, 4  ;;  %s693_s13 = int_to_ptr.vmem [resolvable:$false] %s692_s13 }
  0x26   : > { %s694_s14 = scalar_lea.vmem %s693_s13, 1024  ;;  %p695_p9 = scmp.lt.s32.totalorder %s898_s17, %s693_s13 }
  0x27   : > { %p690_p5 = pnand %p688_p2, %p674_p3  ;;  %p696_p4 = scmp.lt.s32.totalorder %s694_s14, %s687_s10 }
  0x29   : > { %p691_p11 = pneg %p690_p5  ;;  %p697_p7 = por %p696_p4, %p695_p9 }
  0x2b   : > { %p698_p10 = pnand %p697_p7, %p691_p11 }
  0x2d   : > { %701 = shalt.err (!%p698_p10)
}
  0x2e   : > { %s787_s16 = smov 256   ;;  %s788_s4 = smov 16  }
  0x2f   : > { %602 = dma.hbm_to_vmem [thread:$0]  (!%p902_p0), %s896_s15, 512, %s898_s17, %s907_s19, %s787_s16, %s787_s16, %s788_s4  }
  0x30   : > { %p225_p12 = scmp.lt.s32.totalorder %s784_s25, 3  ;;  %p1027_p1 = scmp.ge.s32.totalorder %s784_s25, 1 }
  0x32   : > { %p226_p3 = pnand %p1027_p1, %p225_p12 }
  0x33   : > { %s939_s26 = sand.u32 (!%p226_p3), 1, %s768_s21  }
  0x34   : > { %229 = sbr.rel (%p226_p3) target bundleno = 546 (0x222), region = 40  ;;  %s576_s28 = sshll.u32 (!%p226_p3), %s939_s26, 5 }
  0x35   : > { %s232_s29 = scalar_lea.sflag (!%p226_p3), [#allocation4], %s939_s26  ;;  %s235_s30 = scalar_lea.vmem (!%p226_p3), [#allocation3], %s576_s28 }
  0x3b   : > { %755 = dma.done.wait (%p874_p8), %s232_s29, 512  }
  0x3c   : > { %757 = vsyncadd (%p874_p8), %s232_s29, 4294966784  ;;  %v789_v0 = vmov 0.0   ;;  %v790_v1 = vmov 0   ;;  %v265_v2 = vld [vmem:[%s235_s30 + $0x8] sm:$0xff]  ;;  %v267_v3 = vld [vmem:[%s235_s30 + $0x18] sm:$0xff]  ;;  %vm275_vm0 = vcmask 130048   ;;  %v449_v28 = vlaneseq }
  0x3d   : > { %343 = vmatprep.mubr.f32.mxu0 %v789_v0  ;;  %663 = vset.pattern.permute.xlu0 %v790_v1  ;;  %v264_v4 = vld [vmem:[%s235_s30] sm:$0xff]  ;;  %v591_v5 = vpack.c.bf16 %v267_v3, %v265_v2  ;;  %v266_v6 = vld [vmem:[%s235_s30 + $0x10] sm:$0xff]  ;;  %vm359_vm1 = vcmask 1041408   ;;  %vm355_vm2 = vcmask 15360   ;;  %s353_s10 = sld [smem:[#allocation2]]  ;;  %s590_s12 = sshll.u32 %s776_s23, 9 }
  0x3e   : > { %430 = vmatprep.mubr.f32.mxu1 %v789_v0  ;;  %v269_v7 = vld [vmem:[%s1017_s2] sm:$0x3]  ;;  %v593_v8 = vpack.c.bf16 %v266_v6, %v264_v4  ;;  %v450_v30 = vshrl.u32 %v449_v28, 7  ;;  %s261_s13 = scalar_lea.vmem [#allocation6], %s576_s28  ;;  %s964_s29 = scalar_lea.hbm %s1020_s5, %s590_s12 }
  0x3f   : > { %272 = vperm.xlu0 %663, %v269_v7   ;;  %592 = vmatprep.subr.bf16.mxu0 %v591_v5  ;;  %v268_v9 = vld [vmem:[%s1016_s1] sm:$0x3]  ;;  %s481_s14 = sshll.u32 %s261_s13, 4  ;;  %s466_s23 = scalar_lea.sflag [#allocation5], %s939_s26  ;;  %s966_s14 = int_to_ptr.vmem [resolvable:$true] %s481_s14 }
  0x40   : > { %594 = vmatpush1.bf16.msra.mxu0 %v593_v8  ;;  %v352_v17 = vld [vmem:[%s1018_s3] sm:$0x1]  ;;  %v451_v31 = vsub.s32 0, %v450_v30  ;;  %s702_s28 = scalar_lea.vmem %s966_s14, 512  ;;  %p1028_p9 = scmp.ne.s32.totalorder %s1024_s7, 0 }
  0x41   : > { %p703_p8 = scmp.ne.s32.totalorder %s966_s14, %s702_s28  ;;  %s791_s30 = smov [#allocation6]  }
  0x42   : > { %s706_s15 = sshll.u32 %s791_s30, 4  ;;  %s707_s15 = int_to_ptr.vmem [resolvable:$false] %s706_s15 }
  0x43   : > { %578 = vmatmul.mubr.msk.f32.vlgmr.msra.gmra.mrb[0].mxu0 %vm275_vm0, %v268_v9  ;;  %v354_v18 = vstv %s353_s10  ;;  %p704_p11 = pnand %p703_p8, %p1028_p9  ;;  %s708_s17 = scalar_lea.vmem %s707_s15, 1024 }
  0x44   : > { %p709_p6 = scmp.lt.s32.totalorder %s966_s14, %s707_s15  ;;  %p710_p13 = scmp.lt.s32.totalorder %s708_s17, %s702_s28 }
  0x45   : > { %p705_p0 = pneg %p704_p11 }
  0x46   : > { %p711_p2 = por %p710_p13, %p709_p6 }
  0x48   : > { %p712_p5 = pnand %p711_p2, %p705_p0 }
  0xbe   : > { %v273_v10 = vpop.permute.xlu0 %272 }
 0x116   : > { %v345_v11 = vpop.f32.mrb[0].mxu0 }
 0x117   : > { %v346_v12 = vadd.f32 %v345_v11, %v273_v10  ;;  %v347_v13 = vpop.f32.mrb[1].mxu0 }
 0x118   : > { %v348_v14 = vadd.f32 %v347_v13, %v273_v10 }
 0x119   : > { %v350_v16 = vmax.f32 %v346_v12, 0.0 }
 0x11a   : > { %v351_v15 = vmax.f32 %v348_v14, 0.0 }
 0x11c   : > { %579 = vmatprep.subr.msk.mxu1 %vm359_vm1, %v351_v15 }
 0x11d   : > { %580 = vmatpush1.msk.msra.mxu1 %vm359_vm1, %v350_v16 }
 0x11e   : > { %581 = vmatmul.mubr.msk.f32.vlgmr.msra.gmra.mrb[0].mxu1 %vm355_vm2, %v352_v17 }
 0x1f1   : > { %v432_v19 = vpop.f32.mrb[0].mxu1 }
 0x1f2   : > { %v433_v20 = vadd.f32 %v432_v19, %v354_v18  ;;  %v434_v21 = vpop.f32.mrb[1].mxu1 }
 0x1f3   : > { %v435_v22 = vadd.f32 %v434_v21, %v354_v18 }
 0x1f4   : > { %v582_v23 = vmul.f32 -1.442695, %v433_v20 }
 0x1f5   : > { %v583_v24 = vmul.f32 -1.442695, %v435_v22 }
 0x1f6   : > { %664 = vpow2.f32 %v582_v23 }
 0x1f7   : > { %666 = vpow2.f32 %v583_v24 }
 0x200   : > { %v665_v25 = vpop.eup %664 }
 0x201   : > { %v667_v26 = vpop.eup %666  ;;  %v443_v27 = vadd.f32 1.0, %v665_v25 }
 0x202   : > { %v444_v29 = vadd.f32 1.0, %v667_v26 }
 0x203   : > { %668 = vrcp.f32 %v443_v27 }
 0x204   : > { %670 = vrcp.f32 %v444_v29 }
 0x20d   : > { %v669_v32 = vpop.eup %668 }
 0x20e   : > { %v671_v33 = vpop.eup %670  ;;  %v452_v34 = vrot.slane %v669_v32, %v451_v31 }
 0x20f   : > { %v456_v35 = vrot.slane %v671_v33, %v451_v31 }
 0x210   : > { %v457_v36 = vmul.f32 %v452_v34, %v264_v4  ;;  %v459_v37 = vmul.f32 %v452_v34, %v266_v6 }
 0x211   : > { %v458_v38 = vmul.f32 %v456_v35, %v265_v2  ;;  %v460_v39 = vmul.f32 %v456_v35, %v267_v3 }
 0x212   : > { %461 = vst [vmem:[%s261_s13] sm:$0xff] %v457_v36  ;;  %463 = vst [vmem:[%s261_s13 + $0x10] sm:$0xff] %v459_v37 }
 0x213   : > { %462 = vst [vmem:[%s261_s13 + $0x8] sm:$0xff] %v458_v38  ;;  %464 = vst [vmem:[%s261_s13 + $0x18] sm:$0xff] %v460_v39 }
 0x214   : > { %715 = shalt.err (!%p712_p5)
}
 0x215   : > { %s716_s6 = scalar_lea.hbm %s964_s29, 512  ;;  %s720_s11 = scalar_lea.hbm %s1020_s5, 1024 }
 0x216   : > { %p717_p4 = scmp.ne.s32.totalorder %s964_s29, %s716_s6  ;;  %p721_p12 = scmp.lt.u32.totalorder %s964_s29, %s1020_s5 }
 0x217   : > { %p722_p1 = scmp.lt.u32.totalorder %s720_s11, %s716_s6  ;;  %p724_p8 = scmp.lt.u32.totalorder %s716_s6, %s964_s29 }
 0x218   : > { %p718_p7 = pnand %p717_p4, %p1028_p9 }
 0x219   : > { %p723_p3 = por %p722_p1, %p721_p12 }
 0x21a   : > { %p719_p10 = pneg %p718_p7 }
 0x21b   : > { %p725_p11 = por %p724_p8, %p723_p3 }
 0x21d   : > { %p726_p0 = pnand %p725_p11, %p719_p10 }
 0x21f   : > { %729 = shalt.err (!%p726_p0)
}
 0x220   : > { %s792_s13 = smov 256   ;;  %s793_s16 = smov 16  }
 0x221   : > { %597 = dma.vmem_to_hbm [thread:$0]  (%p1028_p9), %s966_s14, 512, %s964_s29, %s466_s23, %s792_s13, %s792_s13, %s793_s16  }
 0x222 PF: > { %s496_s4 = sand.u32 1, %s764_s20   ;;  %p1029_p6 = scmp.ne.s32.totalorder %s1025_s9, 0 }
 0x223   : > { %p1030_p13 = scmp.ge.s32.totalorder %s784_s25, 2  ;;  %s497_s28 = scalar_lea.sflag [#allocation5], %s496_s4 }
 0x225   : > { %p604_p2 = pnand %p1030_p13, %p1029_p6 }
 0x227   : > { %759 = dma.done.wait (!%p604_p2), %s497_s28, 512  }
 0x228   : > { %761 = vsyncadd (!%p604_p2), %s497_s28, 4294966784  ;;  %s22_s25 = sadd.s32 1, %s784_s25   ;;  %s1031_s20 = smov %s768_s21 }
 0x229   : > { %p19_p5 = scmp.ge.s32.totalorder %s22_s25, 4   ;;  %s1032_s21 = smov %s772_s22 }
 0x22a   : > { %s1033_s22 = smov %s883_s8  ;;  %s1034_s23 = smov %s780_s24 }
 0x22b   : > { %s1035_s24 = smov %s1037_s27  ;;  %21 = sbr.rel (!%p19_p5) target bundleno = 8 (0x8), region = 85 }
 0x232   :  { %502 = vsyncpa [#allocation4], 1 }
 0x233   :  { %504 = vsyncpa [#allocation4 + $0x1], 1 }
 0x234   :  { %505 = vsyncpa [#allocation5], 1 }
 0x235   :  { %507 = vsyncpa [#allocation5 + $0x1], 1 }

</bundles_post_ra>
